<compile_context>
chip_gen: v5e
topology: v5e:2x2
jax: 0.10.0
libtpu: 0.0.40
codegen_flags: <defaults>
</compile_context>

<pallas_src>
import jax
import jax.numpy as jnp
from jax.experimental import pallas as pl
from jax.experimental.pallas import tpu as pltpu

RNN_SIZE = 1024
SPL_SIZE = 64
OUT_SIZE = 9          # 3x3 rotation-matrix representation

LANE = 128
HID_PAD = 128         # hidden width padded 64 -> 128 (zero columns, ReLU-safe)
OUT_PAD = 128         # output padded 9 -> 128 for lane-dense (unmasked) stores


def _round_up(n, m):
    return ((n + m - 1) // m) * m


def spl_joint_kernel(x_ref, w1_ref, b1_ref, w2_ref, b2_ref, o_ref):
    # linear_1: (tb, Dp) bf16 @ (Dp, 128) bf16 -> f32 accumulate on the MXU
    h = jnp.dot(x_ref[...], w1_ref[...], preferred_element_type=jnp.float32)
    # bias + ReLU kept in f32 (fast VPU path on every gen, incl. v5e)
    h = jnp.maximum(h + b1_ref[...], 0.0)
    # linear_2: (tb, 128) bf16 @ (128, 128) bf16 -> f32 accumulate
    y = jnp.dot(h.astype(jnp.bfloat16), w2_ref[...],
                preferred_element_type=jnp.float32)
    o_ref[...] = (y + b2_ref[...]).astype(o_ref.dtype)


def spl_joint_forward(x, w1, b1, w2, b2, *, tb=256):
    """SPL_joint forward: relu(x @ w1 + b1) @ w2 + b2.

    x : (B, D_in) f32
    w1: (D_in, SPL_SIZE)    b1: (1, SPL_SIZE)
    w2: (SPL_SIZE, OUT_SIZE) b2: (1, OUT_SIZE)
    Returns (B, OUT_SIZE) f32.
    """
    B, D_in = x.shape
    D_pad = _round_up(D_in, LANE)

    # Batch tile: multiple of 8 sublanes; don't tile past the (padded) batch
    # so tiny batches run as a single grid step instead of padding to 256.
    tb = max(8, min(tb, _round_up(B, 8)))
    tb = _round_up(tb, 8)
    B_pad = _round_up(B, tb)

    # ---- pad + cast at the pallas_call boundary ---------------------------
    x_p = jnp.zeros((B_pad, D_pad), jnp.bfloat16).at[:B, :D_in].set(
        x.astype(jnp.bfloat16))
    w1_p = jnp.zeros((D_pad, HID_PAD), jnp.bfloat16).at[:D_in, :SPL_SIZE].set(
        w1.astype(jnp.bfloat16))
    b1_p = jnp.zeros((1, HID_PAD), jnp.float32).at[:, :SPL_SIZE].set(
        b1.astype(jnp.float32))
    w2_p = jnp.zeros((HID_PAD, OUT_PAD), jnp.bfloat16).at[:SPL_SIZE, :OUT_SIZE].set(
        w2.astype(jnp.bfloat16))
    b2_p = jnp.zeros((1, OUT_PAD), jnp.float32).at[:, :OUT_SIZE].set(
        b2.astype(jnp.float32))

    grid = (B_pad // tb,)

    out_p = pl.pallas_call(
        spl_joint_kernel,
        out_shape=jax.ShapeDtypeStruct((B_pad, OUT_PAD), jnp.float32),
        grid_spec=pltpu.PrefetchScalarGridSpec(
            num_scalar_prefetch=0,
            grid=grid,
            in_specs=[
                pl.BlockSpec((tb, D_pad), lambda i: (i, 0)),          # x tile
                pl.BlockSpec((D_pad, HID_PAD), lambda i: (0, 0)),     # W1 (full)
                pl.BlockSpec((1, HID_PAD), lambda i: (0, 0)),         # b1
                pl.BlockSpec((HID_PAD, OUT_PAD), lambda i: (0, 0)),   # W2 (full)
                pl.BlockSpec((1, OUT_PAD), lambda i: (0, 0)),         # b2
            ],
            out_specs=pl.BlockSpec((tb, OUT_PAD), lambda i: (i, 0)),
        ),
        compiler_params=pltpu.CompilerParams(
            dimension_semantics=("parallel",),   # batch axis -> megacore-shardable
        ),
    )(x_p, w1_p, b1_p, w2_p, b2_p)

    # Slice the padded rows / lanes back out.
    return out_p[:B, :OUT_SIZE]


def init_params(key, n_parents):
    """Deterministic init mimicking torch nn.Linear default:
    U(-1/sqrt(fan_in), 1/sqrt(fan_in)) for both weight and bias."""
    d_in = RNN_SIZE + n_parents * OUT_SIZE
    k1, k2, k3, k4 = jax.random.split(key, 4)

    bound1 = 1.0 / jnp.sqrt(d_in)
    w1 = jax.random.uniform(k1, (d_in, SPL_SIZE), jnp.float32, -bound1, bound1)
    b1 = jax.random.uniform(k2, (1, SPL_SIZE), jnp.float32, -bound1, bound1)

    bound2 = 1.0 / jnp.sqrt(SPL_SIZE)
    w2 = jax.random.uniform(k3, (SPL_SIZE, OUT_SIZE), jnp.float32, -bound2, bound2)
    b2 = jax.random.uniform(k4, (1, OUT_SIZE), jnp.float32, -bound2, bound2)
    return w1, b1, w2, b2


def reference_forward(x, w1, b1, w2, b2):
    h = jnp.maximum(x @ w1 + b1, 0.0)
    return h @ w2 + b2


if __name__ == "__main__":
    key = jax.random.PRNGKey(0)
    n_parents = 2                            # 2 parent joints -> 18 extra features
    batch = 16
    d_in = RNN_SIZE + n_parents * OUT_SIZE   # 1042

    kx, kp = jax.random.split(key)
    x = jax.random.normal(kx, (batch, d_in), jnp.float32)
    w1, b1, w2, b2 = init_params(kp, n_parents)

    out = spl_joint_forward(x, w1, b1, w2, b2)
    out = jax.block_until_ready(out)

    ref = reference_forward(x, w1, b1, w2, b2)
    assert out.shape == (batch, OUT_SIZE)
    # bf16 matmul inputs with f32 accumulation -> loosened tolerance.
    assert jnp.allclose(out, ref, atol=3e-2, rtol=3e-2), "mismatch vs reference"

    print("KERNEL_OK")
</pallas_src>

<mosaic_0001>
module attributes {stable_mosaic.version = 11 : i64} {
  func.func @spl_joint_kernel(%arg0: i32, %arg1: memref<16x1152xbf16, #tpu.memory_space<vmem>>, %arg2: memref<1152x128xbf16, #tpu.memory_space<vmem>>, %arg3: memref<1x128xf32, #tpu.memory_space<vmem>>, %arg4: memref<128x128xbf16, #tpu.memory_space<vmem>>, %arg5: memref<1x128xf32, #tpu.memory_space<vmem>>, %arg6: memref<16x128xf32, #tpu.memory_space<vmem>>) attributes {dimension_semantics = [#tpu.dimension_semantics<parallel>], iteration_bounds = array<i64: 1>, scalar_prefetch = 0 : i64, scratch_operands = 0 : i64, tpu.core_type = #tpu.core_type<tc>, window_params = [{transform_indices = @transform_0, window_bounds = array<i64: 16, 1152>}, {pipeline_mode = #tpu.pipeline_mode<synchronous>, transform_indices = @transform_1, window_bounds = array<i64: 1152, 128>}, {pipeline_mode = #tpu.pipeline_mode<synchronous>, transform_indices = @transform_2, window_bounds = array<i64: 1, 128>}, {pipeline_mode = #tpu.pipeline_mode<synchronous>, transform_indices = @transform_3, window_bounds = array<i64: 128, 128>}, {pipeline_mode = #tpu.pipeline_mode<synchronous>, transform_indices = @transform_4, window_bounds = array<i64: 1, 128>}, {transform_indices = @transform_5, window_bounds = array<i64: 16, 128>}]} {
    %c0 = arith.constant 0 : index
    %c0_0 = arith.constant 0 : index
    %0 = vector.load %arg1[%c0, %c0_0] : memref<16x1152xbf16, #tpu.memory_space<vmem>>, vector<16x1152xbf16>
    %c0_1 = arith.constant 0 : index
    %c0_2 = arith.constant 0 : index
    %1 = vector.load %arg2[%c0_1, %c0_2] : memref<1152x128xbf16, #tpu.memory_space<vmem>>, vector<1152x128xbf16>
    %cst = arith.constant dense<0.000000e+00> : vector<16x128xf32>
    %2 = tpu.matmul %0, %1, %cst {dimension_numbers = #tpu.dot_dimension_numbers<[1], [0], [0], [1], [0, 0, 1, 1], [], []>} : vector<16x1152xbf16>, vector<1152x128xbf16>, vector<16x128xf32> -> vector<16x128xf32>
    %c0_3 = arith.constant 0 : index
    %c0_4 = arith.constant 0 : index
    %3 = vector.load %arg3[%c0_3, %c0_4] : memref<1x128xf32, #tpu.memory_space<vmem>>, vector<1x128xf32>
    %4 = vector.broadcast %3 : vector<1x128xf32> to vector<16x128xf32>
    %5 = arith.addf %2, %4 : vector<16x128xf32>
    %cst_5 = arith.constant 0.000000e+00 : f32
    %6 = vector.broadcast %cst_5 : f32 to vector<16x128xf32>
    %7 = arith.maximumf %5, %6 : vector<16x128xf32>
    %8 = arith.truncf %7 : vector<16x128xf32> to vector<16x128xbf16>
    %c0_6 = arith.constant 0 : index
    %c0_7 = arith.constant 0 : index
    %9 = vector.load %arg4[%c0_6, %c0_7] : memref<128x128xbf16, #tpu.memory_space<vmem>>, vector<128x128xbf16>
    %cst_8 = arith.constant dense<0.000000e+00> : vector<16x128xf32>
    %10 = tpu.matmul %8, %9, %cst_8 {dimension_numbers = #tpu.dot_dimension_numbers<[1], [0], [0], [1], [0, 0, 1, 1], [], []>} : vector<16x128xbf16>, vector<128x128xbf16>, vector<16x128xf32> -> vector<16x128xf32>
    %c0_9 = arith.constant 0 : index
    %c0_10 = arith.constant 0 : index
    %11 = vector.load %arg5[%c0_9, %c0_10] : memref<1x128xf32, #tpu.memory_space<vmem>>, vector<1x128xf32>
    %12 = vector.broadcast %11 : vector<1x128xf32> to vector<16x128xf32>
    %13 = arith.addf %10, %12 : vector<16x128xf32>
    %c0_11 = arith.constant 0 : index
    %c0_12 = arith.constant 0 : index
    %14 = vector.load %arg6[%c0_11, %c0_12] : memref<16x128xf32, #tpu.memory_space<vmem>>, vector<16x128xf32>
    tpu.vector_store %arg6[%c0_11, %c0_12], %13 {strides = array<i32>} : memref<16x128xf32, #tpu.memory_space<vmem>>, vector<16x128xf32>,
    return
  }
  func.func @transform_0(%arg0: i32) -> (i32, i32) {
    %c0_i32 = arith.constant 0 : i32
    %c0_i32_0 = arith.constant 0 : i32
    return %arg0, %c0_i32 : i32, i32
  }
  func.func @transform_1(%arg0: i32) -> (i32, i32) {
    %c0_i32 = arith.constant 0 : i32
    %c0_i32_0 = arith.constant 0 : i32
    %c0_i32_1 = arith.constant 0 : i32
    return %c0_i32, %c0_i32_0 : i32, i32
  }
  func.func @transform_2(%arg0: i32) -> (i32, i32) {
    %c0_i32 = arith.constant 0 : i32
    %c0_i32_0 = arith.constant 0 : i32
    %c0_i32_1 = arith.constant 0 : i32
    return %c0_i32, %c0_i32_0 : i32, i32
  }
  func.func @transform_3(%arg0: i32) -> (i32, i32) {
    %c0_i32 = arith.constant 0 : i32
    %c0_i32_0 = arith.constant 0 : i32
    %c0_i32_1 = arith.constant 0 : i32
    return %c0_i32, %c0_i32_0 : i32, i32
  }
  func.func @transform_4(%arg0: i32) -> (i32, i32) {
    %c0_i32 = arith.constant 0 : i32
    %c0_i32_0 = arith.constant 0 : i32
    %c0_i32_1 = arith.constant 0 : i32
    return %c0_i32, %c0_i32_0 : i32, i32
  }
  func.func @transform_5(%arg0: i32) -> (i32, i32) {
    %c0_i32 = arith.constant 0 : i32
    %c0_i32_0 = arith.constant 0 : i32
    return %arg0, %c0_i32 : i32, i32
  }
}

</mosaic_0001>

<bundles_post_ra>
// kernel: tpu_custom_call.1
= control target key start
LH: loop header
LB: loop body
LE: loop exit
PB: predicated region body
PF: predicated region fallthrough
CT: control target
= control target key end

     0   :  { %10 = vsyncpa [#allocation3], 0  ;;  %s1554_s0 = inlined_call_operand.hbm [shape: bf16[16,1152], index: 0, kind: input, shape index: {}]   ;;  %s1555_s1 = inlined_call_operand.hbm [shape: bf16[1152,128], index: 1, kind: input, shape index: {}]   ;;  %s1556_s2 = inlined_call_operand.vmem [shape: f32[1,128], index: 2, kind: input, shape index: {}]   ;;  %s1557_s3 = inlined_call_operand.hbm [shape: bf16[128,128], index: 3, kind: input, shape index: {}]   ;;  %s1558_s4 = inlined_call_operand.vmem [shape: f32[1,128], index: 4, kind: input, shape index: {}]   ;;  %s1559_s5 = inlined_call_operand.hbm [shape: f32[16,128], index: 5, kind: output, shape index: {}]  }
   0x1   :  { %11 = vsyncpa [#allocation6], 0  ;;  %s30_s20 = sshll.u32 %s1555_s1, 4  ;;  %s31_s20 = int_to_ptr.hbm [resolvable:$true] %s30_s20 }
   0x2   :  { %12 = vsyncpa [#allocation4], 0  ;;  %s1496_s21 = smov [#allocation5]   ;;  %s17_s25 = sshll.u32 %s1554_s0, 4  ;;  %s18_s25 = int_to_ptr.hbm [resolvable:$true] %s17_s25 }
   0x3   :  { %s32_s22 = sshll.u32 %s1496_s21, 4  ;;  %s1497_s26 = smov 64   ;;  %s33_s22 = int_to_ptr.vmem [resolvable:$true] %s32_s22 }
   0x4   :  { %s1498_s27 = smov 4   ;;  %s1499_s28 = smov [#allocation2]  }
   0x5   :  { %38 = dma.hbm_to_vmem [thread:$0]  %s31_s20, 9216, %s33_s22, [#allocation6], %s1497_s26, %s1497_s26, %s1498_s27  }
   0x6   :  { %s19_s29 = sshll.u32 %s1499_s28, 4  ;;  %s1500_s30 = smov 576   ;;  %s20_s29 = int_to_ptr.vmem [resolvable:$true] %s19_s29 }
   0x7   :  { %s1501_s6 = smov 36   ;;  %s45_s8 = sshll.u32 %s1557_s3, 4  ;;  %s46_s8 = int_to_ptr.hbm [resolvable:$true] %s45_s8 }
   0x8   :  { %25 = dma.hbm_to_vmem [thread:$0]  %s18_s25, 1152, %s20_s29, [#allocation3], %s1500_s30, %s1500_s30, %s1501_s6  }
   0x9   :  { %s1502_s9 = smov [#allocation7]  }
   0xa   :  { %s47_s10 = sshll.u32 %s1502_s9, 4  ;;  %s48_s10 = int_to_ptr.vmem [resolvable:$true] %s47_s10 }
   0xb   :  { %53 = dma.hbm_to_vmem [thread:$0]  %s46_s8, 1024, %s48_s10, [#allocation6], %s1497_s26, %s1497_s26, %s1498_s27  }
   0xc   :  { %1490 = dma.done.wait [#allocation3], 1152  }
   0xd   :  { %1491 = vsyncadd [#allocation3], 4294966144 }
   0xe   :  { %1492 = dma.done.wait [#allocation6], 10240  }
   0xf   :  { %1493 = vsyncadd [#allocation6], 4294957056  ;;  %v1309_v0 = vld [vmem:[#allocation5 + $0x38] sm:$0xff]  ;;  %v1308_v4 = vld [vmem:[#allocation5 + $0x30] sm:$0xff]  ;;  %s1503_s12 = smov [#allocation8]   ;;  %s923_s16 = sshll.u32 %s1559_s5, 4  ;;  %s924_s16 = int_to_ptr.hbm [resolvable:$true] %s923_s16 }
  0x10   :  { %v1325_v1 = vld [vmem:[#allocation5 + $0xb8] sm:$0xff]  ;;  %704 = vmatpush.bf16.msra.mxu0 %v1309_v0  ;;  %v1324_v5 = vld [vmem:[#allocation5 + $0xb0] sm:$0xff]  ;;  %v1307_v8 = vld [vmem:[#allocation5 + $0x28] sm:$0xff]  ;;  %s921_s13 = sshll.u32 %s1503_s12, 4  ;;  %s1504_s17 = smov 128   ;;  %s922_s13 = int_to_ptr.vmem [resolvable:$true] %s921_s13 }
  0x11   :  { %v1317_v2 = vld [vmem:[#allocation5 + $0x78] sm:$0xff]  ;;  %732 = vmatpush.bf16.msra.mxu2 %v1325_v1  ;;  %v1316_v6 = vld [vmem:[#allocation5 + $0x70] sm:$0xff]  ;;  %v1323_v9 = vld [vmem:[#allocation5 + $0xa8] sm:$0xff]  ;;  %s1505_s18 = smov 8  }
  0x12   :  { %v1333_v3 = vld [vmem:[#allocation5 + $0xf8] sm:$0xff]  ;;  %718 = vmatpush.bf16.msra.mxu1 %v1317_v2  ;;  %v1332_v7 = vld [vmem:[#allocation5 + $0xf0] sm:$0xff]  ;;  %v1315_v10 = vld [vmem:[#allocation5 + $0x68] sm:$0xff] }
  0x13   :  { %746 = vmatpush.bf16.msra.mxu3 %v1333_v3  ;;  %v1331_v11 = vld [vmem:[#allocation5 + $0xe8] sm:$0xff]  ;;  %v1306_v12 = vld [vmem:[#allocation5 + $0x20] sm:$0xff]  ;;  %v1305_v16 = vld [vmem:[#allocation5 + $0x18] sm:$0xff] }
  0x14   :  { %705 = vmatpush.bf16.msra.mxu0 %v1308_v4  ;;  %v1322_v13 = vld [vmem:[#allocation5 + $0xa0] sm:$0xff]  ;;  %v1321_v17 = vld [vmem:[#allocation5 + $0x98] sm:$0xff]  ;;  %v1304_v20 = vld [vmem:[#allocation5 + $0x10] sm:$0xff] }
  0x15   :  { %733 = vmatpush.bf16.msra.mxu2 %v1324_v5  ;;  %v1314_v14 = vld [vmem:[#allocation5 + $0x60] sm:$0xff]  ;;  %v1313_v18 = vld [vmem:[#allocation5 + $0x58] sm:$0xff]  ;;  %v1320_v21 = vld [vmem:[#allocation5 + $0x90] sm:$0xff] }
  0x16   :  { %719 = vmatpush.bf16.msra.mxu1 %v1316_v6  ;;  %v1330_v15 = vld [vmem:[#allocation5 + $0xe0] sm:$0xff]  ;;  %v1329_v19 = vld [vmem:[#allocation5 + $0xd8] sm:$0xff]  ;;  %v1312_v22 = vld [vmem:[#allocation5 + $0x50] sm:$0xff] }
  0x17   :  { %747 = vmatpush.bf16.msra.mxu3 %v1332_v7  ;;  %v1328_v23 = vld [vmem:[#allocation5 + $0xd0] sm:$0xff]  ;;  %v1303_v24 = vld [vmem:[#allocation5 + $0x8] sm:$0xff]  ;;  %v1302_v28 = vld [vmem:[#allocation5] sm:$0xff] }
  0x18   :  { %706 = vmatpush.bf16.msra.mxu0 %v1307_v8  ;;  %v1319_v25 = vld [vmem:[#allocation5 + $0x88] sm:$0xff]  ;;  %v1318_v29 = vld [vmem:[#allocation5 + $0x80] sm:$0xff]  ;;  %v1341_v30 = vld [vmem:[#allocation5 + $0x138] sm:$0xff] }
  0x19   :  { %734 = vmatpush.bf16.msra.mxu2 %v1323_v9  ;;  %v1311_v26 = vld [vmem:[#allocation5 + $0x48] sm:$0xff]  ;;  %v1357_v31 = vld [vmem:[#allocation5 + $0x1b8] sm:$0xff]  ;;  %v1310_v32 = vld [vmem:[#allocation5 + $0x40] sm:$0xff] }
  0x1a   :  { %720 = vmatpush.bf16.msra.mxu1 %v1315_v10  ;;  %v1327_v27 = vld [vmem:[#allocation5 + $0xc8] sm:$0xff]  ;;  %v1326_v33 = vld [vmem:[#allocation5 + $0xc0] sm:$0xff]  ;;  %v939_v34 = vld [vmem:[#allocation2] sm:$0xf] }
  0x1b   :  { %748 = vmatpush.bf16.msra.mxu3 %v1331_v11  ;;  %v1297_v35 = vld [vmem:[#allocation2 + $0x20] sm:$0xf0]  ;;  %v947_v36 = vld [vmem:[#allocation2 + $0x8] sm:$0xf]  ;;  %v1298_v37 = vld [vmem:[#allocation2 + $0x28] sm:$0xf0] }
  0x1c   :  { %707 = vmatpush.bf16.msra.mxu0 %v1306_v12  ;;  %v1349_v38 = vld [vmem:[#allocation5 + $0x178] sm:$0xff]  ;;  %v941_v41 = vld [vmem:[#allocation2 + $0x24] sm:$0xf0]  ;;  %v1294_v42 = vld [vmem:[#allocation2 + $0xc] sm:$0xf]  ;;  %v940_v44 = vor.u32 %v1297_v35, %v939_v34  ;;  %v948_v45 = vor.u32 %v1298_v37, %v947_v36 }
  0x1d   :  { %735 = vmatpush.bf16.msra.mxu2 %v1322_v13  ;;  %v1365_v39 = vld [vmem:[#allocation5 + $0x1f8] sm:$0xff]  ;;  %v949_v43 = vld [vmem:[#allocation2 + $0x2c] sm:$0xf0]  ;;  %v1340_v46 = vld [vmem:[#allocation5 + $0x130] sm:$0xff] }
  0x1e   :  { %721 = vmatpush.bf16.msra.mxu1 %v1314_v14  ;;  %v1293_v40 = vld [vmem:[#allocation2 + $0x4] sm:$0xf]  ;;  %v1356_v47 = vld [vmem:[#allocation5 + $0x1b0] sm:$0xff]  ;;  %v952_v49 = vor.u32 %v1294_v42, %v949_v43  ;;  %v1339_v52 = vld [vmem:[#allocation5 + $0x128] sm:$0xff] }
  0x1f   :  { %749 = vmatpush.bf16.msra.mxu3 %v1330_v15  ;;  %v944_v48 = vor.u32 %v1293_v40, %v941_v41  ;;  %v1348_v50 = vld [vmem:[#allocation5 + $0x170] sm:$0xff]  ;;  %v1355_v53 = vld [vmem:[#allocation5 + $0x1a8] sm:$0xff]  ;;  %v1338_v56 = vld [vmem:[#allocation5 + $0x120] sm:$0xff] }
  0x20   :  { %708 = vmatpush.bf16.msra.mxu0 %v1305_v16  ;;  %v1364_v51 = vld [vmem:[#allocation5 + $0x1f0] sm:$0xff]  ;;  %v1347_v54 = vld [vmem:[#allocation5 + $0x168] sm:$0xff]  ;;  %v1354_v57 = vld [vmem:[#allocation5 + $0x1a0] sm:$0xff] }
  0x21   :  { %736 = vmatpush.bf16.msra.mxu2 %v1321_v17  ;;  %v1363_v55 = vld [vmem:[#allocation5 + $0x1e8] sm:$0xff]  ;;  %v1346_v58 = vld [vmem:[#allocation5 + $0x160] sm:$0xff]  ;;  %v1337_v60 = vld [vmem:[#allocation5 + $0x118] sm:$0xff] }
  0x22   :  { %722 = vmatpush.bf16.msra.mxu1 %v1313_v18  ;;  %v1362_v59 = vld [vmem:[#allocation5 + $0x1e0] sm:$0xff]  ;;  %v1353_v61 = vld [vmem:[#allocation5 + $0x198] sm:$0xff]  ;;  %v1336_v0 = vld [vmem:[#allocation5 + $0x110] sm:$0xff] }
  0x23   :  { %750 = vmatpush.bf16.msra.mxu3 %v1329_v19  ;;  %v1345_v62 = vld [vmem:[#allocation5 + $0x158] sm:$0xff]  ;;  %v1352_v1 = vld [vmem:[#allocation5 + $0x190] sm:$0xff]  ;;  %v1335_v4 = vld [vmem:[#allocation5 + $0x108] sm:$0xff] }
  0x24   :  { %709 = vmatpush.bf16.msra.mxu0 %v1304_v20  ;;  %v1361_v63 = vld [vmem:[#allocation5 + $0x1d8] sm:$0xff]  ;;  %v1344_v2 = vld [vmem:[#allocation5 + $0x150] sm:$0xff]  ;;  %v1351_v5 = vld [vmem:[#allocation5 + $0x188] sm:$0xff] }
  0x25   :  { %737 = vmatpush.bf16.msra.mxu2 %v1320_v21  ;;  %v1360_v3 = vld [vmem:[#allocation5 + $0x1d0] sm:$0xff]  ;;  %v1343_v6 = vld [vmem:[#allocation5 + $0x148] sm:$0xff]  ;;  %v1334_v8 = vld [vmem:[#allocation5 + $0x100] sm:$0xff] }
  0x26   :  { %723 = vmatpush.bf16.msra.mxu1 %v1312_v22  ;;  %v1359_v7 = vld [vmem:[#allocation5 + $0x1c8] sm:$0xff]  ;;  %v1350_v9 = vld [vmem:[#allocation5 + $0x180] sm:$0xff]  ;;  %v1373_v10 = vld [vmem:[#allocation5 + $0x238] sm:$0xff] }
  0x27   :  { %751 = vmatpush.bf16.msra.mxu3 %v1328_v23  ;;  %v955_v11 = vld [vmem:[#allocation2 + $0x10] sm:$0xf]  ;;  %v1299_v12 = vld [vmem:[#allocation2 + $0x30] sm:$0xf0]  ;;  %v963_v13 = vld [vmem:[#allocation2 + $0x18] sm:$0xf] }
  0x28   :  { %710 = vmatpush.bf16.msra.mxu0 %v1303_v24  ;;  %v1300_v14 = vld [vmem:[#allocation2 + $0x38] sm:$0xf0]  ;;  %v1342_v15 = vld [vmem:[#allocation5 + $0x140] sm:$0xff]  ;;  %v1295_v17 = vld [vmem:[#allocation2 + $0x14] sm:$0xf]  ;;  %v956_v21 = vor.u32 %v1299_v12, %v955_v11 }
  0x29   :  { %738 = vmatpush.bf16.msra.mxu2 %v1319_v25  ;;  %v1358_v16 = vld [vmem:[#allocation5 + $0x1c0] sm:$0xff]  ;;  %v957_v18 = vld [vmem:[#allocation2 + $0x34] sm:$0xf0]  ;;  %v1296_v19 = vld [vmem:[#allocation2 + $0x1c] sm:$0xf]  ;;  %v964_v22 = vor.u32 %v1300_v14, %v963_v13 }
  0x2a   :  { %724 = vmatpush.bf16.msra.mxu1 %v1311_v26  ;;  %v965_v20 = vld [vmem:[#allocation2 + $0x3c] sm:$0xf0]  ;;  %v960_v23 = vor.u32 %v1295_v17, %v957_v18  ;;  %v1372_v25 = vld [vmem:[#allocation5 + $0x230] sm:$0xff]  ;;  %v1371_v26 = vld [vmem:[#allocation5 + $0x228] sm:$0xff] }
  0x2b   :  { %752 = vmatpush.bf16.msra.mxu3 %v1327_v27  ;;  %v968_v24 = vor.u32 %v1296_v19, %v965_v20  ;;  %v1370_v27 = vld [vmem:[#allocation5 + $0x220] sm:$0xff]  ;;  %v1381_v35 = vld [vmem:[#allocation7 + $0x38] sm:$0xff]  ;;  %v1380_v36 = vld [vmem:[#allocation7 + $0x30] sm:$0xff] }
  0x2c   :  { %711 = vmatpush.bf16.msra.mxu0 %v1302_v28  ;;  %v1369_v28 = vld [vmem:[#allocation5 + $0x218] sm:$0xff]  ;;  %v1379_v37 = vld [vmem:[#allocation7 + $0x28] sm:$0xff]  ;;  %v1376_v43 = vld [vmem:[#allocation7 + $0x10] sm:$0xff] }
  0x2d   :  { %739 = vmatpush.bf16.msra.mxu2 %v1318_v29  ;;  %v1368_v29 = vld [vmem:[#allocation5 + $0x210] sm:$0xff]  ;;  %v1377_v40 = vld [vmem:[#allocation7 + $0x18] sm:$0xff] }
  0x2e   :  { %725 = vmatpush.bf16.msra.mxu1 %v1310_v32  ;;  %v971_v32 = vld [vmem:[#allocation2 + $0x20] sm:$0xf] }
  0x2f   :  { %753 = vmatpush.bf16.msra.mxu3 %v1326_v33  ;;  %712 = vmatmul.bf16.vlgmr.msra.gmra.mxu0 %v940_v44  ;;  %v1301_v33 = vld [vmem:[#allocation2 + $0x40] sm:$0xf0]  ;;  %v1393_v19 = vld [vmem:[%s1558_s4] ss:$0 sm:$0xff] }
  0x30   :  { %760 = vmatpush.bf16.msrb.mxu0 %v1341_v30  ;;  %740 = vmatmul.bf16.vlgmr.msra.gmra.mxu2 %v948_v45  ;;  %v1367_v30 = vld [vmem:[#allocation5 + $0x208] sm:$0xff]  ;;  %v972_v34 = vor.u32 %v1301_v33, %v971_v32  ;;  %v1392_v45 = vld [vmem:[%s1556_s2] ss:$0 sm:$0xff] }
  0x31   :  { %788 = vmatpush.bf16.msrb.mxu2 %v1357_v31  ;;  %726 = vmatmul.bf16.vlgmr.msra.gmra.mxu1 %v944_v48  ;;  %v1366_v31 = vld [vmem:[#allocation5 + $0x200] sm:$0xff] }
  0x32   :  { %774 = vmatpush.bf16.msrb.mxu1 %v1349_v38  ;;  %754 = vmatmul.bf16.vlgmr.msra.gmra.mxu3 %v952_v49  ;;  %v1378_v38 = vld [vmem:[#allocation7 + $0x20] sm:$0xff] }
  0x33   :  { %802 = vmatpush.bf16.msrb.mxu3 %v1365_v39 }
  0x34   :  { %761 = vmatpush.bf16.msrb.mxu0 %v1340_v46 }
  0x35   :  { %789 = vmatpush.bf16.msrb.mxu2 %v1356_v47  ;;  %v1375_v47 = vld [vmem:[#allocation7 + $0x8] sm:$0xff] }
  0x36   :  { %775 = vmatpush.bf16.msrb.mxu1 %v1348_v50  ;;  %v1374_v50 = vld [vmem:[#allocation7] sm:$0xff] }
  0x37   :  { %803 = vmatpush.bf16.msrb.mxu3 %v1364_v51 }
  0x38   :  { %762 = vmatpush.bf16.msrb.mxu0 %v1339_v52 }
  0x39   :  { %790 = vmatpush.bf16.msrb.mxu2 %v1355_v53 }
  0x3a   :  { %776 = vmatpush.bf16.msrb.mxu1 %v1347_v54 }
  0x3b   :  { %804 = vmatpush.bf16.msrb.mxu3 %v1363_v55 }
  0x3c   :  { %763 = vmatpush.bf16.msrb.mxu0 %v1338_v56 }
  0x3d   :  { %791 = vmatpush.bf16.msrb.mxu2 %v1354_v57 }
  0x3e   :  { %777 = vmatpush.bf16.msrb.mxu1 %v1346_v58 }
  0x3f   :  { %805 = vmatpush.bf16.msrb.mxu3 %v1362_v59 }
  0x40   :  { %764 = vmatpush.bf16.msrb.mxu0 %v1337_v60 }
  0x41   :  { %792 = vmatpush.bf16.msrb.mxu2 %v1353_v61 }
  0x42   :  { %778 = vmatpush.bf16.msrb.mxu1 %v1345_v62 }
  0x43   :  { %806 = vmatpush.bf16.msrb.mxu3 %v1361_v63 }
  0x44   :  { %765 = vmatpush.bf16.msrb.mxu0 %v1336_v0 }
  0x45   :  { %793 = vmatpush.bf16.msrb.mxu2 %v1352_v1 }
  0x46   :  { %779 = vmatpush.bf16.msrb.mxu1 %v1344_v2 }
  0x47   :  { %807 = vmatpush.bf16.msrb.mxu3 %v1360_v3 }
  0x48   :  { %766 = vmatpush.bf16.msrb.mxu0 %v1335_v4 }
  0x49   :  { %794 = vmatpush.bf16.msrb.mxu2 %v1351_v5 }
  0x4a   :  { %780 = vmatpush.bf16.msrb.mxu1 %v1343_v6 }
  0x4b   :  { %808 = vmatpush.bf16.msrb.mxu3 %v1359_v7 }
  0x4c   :  { %767 = vmatpush.bf16.msrb.mxu0 %v1334_v8 }
  0x4d   :  { %795 = vmatpush.bf16.msrb.mxu2 %v1350_v9 }
  0x4e   :  { %781 = vmatpush.bf16.msrb.mxu1 %v1342_v15 }
  0x4f   :  { %809 = vmatpush.bf16.msrb.mxu3 %v1358_v16  ;;  %768 = vmatmul.bf16.vlgmr.msrb.gmra.mxu0 %v956_v21 }
  0x50   :  { %816 = vmatpush.bf16.msra.mxu0 %v1373_v10  ;;  %796 = vmatmul.bf16.vlgmr.msrb.gmra.mxu2 %v964_v22 }
  0x51   :  { %782 = vmatmul.bf16.vlgmr.msrb.gmra.mxu1 %v960_v23 }
  0x52   :  { %810 = vmatmul.bf16.vlgmr.msrb.gmra.mxu3 %v968_v24  ;;  %901 = vmatpush.bf16.msra.mxu1 %v1381_v35 }
  0x54   :  { %817 = vmatpush.bf16.msra.mxu0 %v1372_v25 }
  0x56   :  { %902 = vmatpush.bf16.msra.mxu1 %v1380_v36 }
  0x58   :  { %818 = vmatpush.bf16.msra.mxu0 %v1371_v26 }
  0x5a   :  { %903 = vmatpush.bf16.msra.mxu1 %v1379_v37 }
  0x5c   :  { %819 = vmatpush.bf16.msra.mxu0 %v1370_v27 }
  0x5e   :  { %904 = vmatpush.bf16.msra.mxu1 %v1378_v38 }
  0x60   :  { %820 = vmatpush.bf16.msra.mxu0 %v1369_v28 }
  0x62   :  { %905 = vmatpush.bf16.msra.mxu1 %v1377_v40 }
  0x64   :  { %821 = vmatpush.bf16.msra.mxu0 %v1368_v29 }
  0x66   :  { %906 = vmatpush.bf16.msra.mxu1 %v1376_v43 }
  0x68   :  { %822 = vmatpush.bf16.msra.mxu0 %v1367_v30 }
  0x6a   :  { %907 = vmatpush.bf16.msra.mxu1 %v1375_v47 }
  0x6c   :  { %823 = vmatpush.bf16.msra.mxu0 %v1366_v31 }
  0x6e   :  { %908 = vmatpush.bf16.msra.mxu1 %v1374_v50 }
  0x6f   :  { %824 = vmatmul.bf16.vlgmr.msra.gmra.mxu0 %v972_v34 }
  0xac   :  { %v713_v39 = vpop.f32.mrf.mxu0 }
  0xad   :  { %v714_v48 = vadd.f32 %v1392_v45, %v713_v39 }
  0xae   :  { %v727_v41 = vpop.f32.mrf.mxu1 }
  0xaf   :  { %v728_v52 = vadd.f32 %v727_v41, %v714_v48 }
  0xb3   :  { %v741_v42 = vpop.f32.mrf.mxu2 }
  0xb4   :  { %v715_v44 = vpop.f32.mrf.mxu0  ;;  %v742_v56 = vadd.f32 %v741_v42, %v728_v52 }
  0xb5   :  { %v755_v46 = vpop.f32.mrf.mxu3  ;;  %v716_v54 = vadd.f32 %v1392_v45, %v715_v44 }
  0xb6   :  { %v729_v49 = vpop.f32.mrf.mxu1  ;;  %v756_v59 = vadd.f32 %v755_v46, %v742_v56 }
  0xb7   :  { %v730_v57 = vadd.f32 %v729_v49, %v716_v54 }
  0xbb   :  { %v743_v51 = vpop.f32.mrf.mxu2 }
  0xbc   :  { %v744_v61 = vadd.f32 %v743_v51, %v730_v57 }
  0xbd   :  { %v757_v55 = vpop.f32.mrf.mxu3 }
  0xbe   :  { %v758_v1 = vadd.f32 %v757_v55, %v744_v61 }
  0xcc   :  { %v769_v53 = vpop.f32.mrf.mxu0 }
  0xcd   :  { %v770_v63 = vadd.f32 %v769_v53, %v756_v59 }
  0xce   :  { %v783_v58 = vpop.f32.mrf.mxu1 }
  0xcf   :  { %v784_v2 = vadd.f32 %v783_v58, %v770_v63 }
  0xd3   :  { %v797_v60 = vpop.f32.mrf.mxu2 }
  0xd4   :  { %v771_v62 = vpop.f32.mrf.mxu0  ;;  %v798_v7 = vadd.f32 %v797_v60, %v784_v2 }
  0xd5   :  { %v811_v0 = vpop.f32.mrf.mxu3  ;;  %v772_v3 = vadd.f32 %v771_v62, %v758_v1 }
  0xd6   :  { %v785_v4 = vpop.f32.mrf.mxu1  ;;  %v812_v11 = vadd.f32 %v811_v0, %v798_v7 }
  0xd7   :  { %v786_v8 = vadd.f32 %v785_v4, %v772_v3 }
  0xdb   :  { %v799_v5 = vpop.f32.mrf.mxu2 }
  0xdc   :  { %v800_v9 = vadd.f32 %v799_v5, %v786_v8 }
  0xdd   :  { %v813_v10 = vpop.f32.mrf.mxu3 }
  0xde   :  { %v814_v12 = vadd.f32 %v813_v10, %v800_v9 }
  0xec   :  { %v825_v6 = vpop.f32.mrf.mxu0 }
  0xed   :  { %v826_v13 = vadd.f32 %v825_v6, %v812_v11 }
  0xef   :  { %v830_v16 = vmax.f32 %v826_v13, 0.0 }
  0xf4   :  { %v827_v14 = vpop.f32.mrf.mxu0 }
  0xf5   :  { %v828_v15 = vadd.f32 %v827_v14, %v814_v12 }
  0xf7   :  { %v831_v17 = vmax.f32 %v828_v15, 0.0 }
  0xf9   :  { %v832_v18 = vpack.c.bf16 %v831_v17, %v830_v16 }
  0xfb   :  { %909 = vmatmul.bf16.vlgmr.msra.gmra.mxu1 %v832_v18 }
 0x178   :  { %v910_v20 = vpop.f32.mrf.mxu1 }
 0x179   :  { %v911_v21 = vadd.f32 %v1393_v19, %v910_v20 }
 0x17b   :  { %915 = vst [vmem:[#allocation8] sm:$0xff] %v911_v21 }
 0x180   :  { %v912_v22 = vpop.f32.mrf.mxu1 }
 0x181   :  { %v913_v23 = vadd.f32 %v1393_v19, %v912_v22 }
 0x183   :  { %916 = vst [vmem:[#allocation8 + $0x8] sm:$0xff] %v913_v23 }
 0x184   :  { %929 = dma.vmem_to_hbm [thread:$0]  %s922_s13, 256, %s924_s16, [#allocation4], %s1504_s17, %s1504_s17, %s1505_s18  }
 0x185   :  { %1494 = dma.done.wait [#allocation4], 256  }
 0x186   :  { %1495 = vsyncadd [#allocation4], 4294967040 }
 0x187   :  { %934 = vsyncpa [#allocation3], 1 }
 0x188   :  { %935 = vsyncpa [#allocation6], 1 }
 0x189   :  { %936 = vsyncpa [#allocation4], 1 }

</bundles_post_ra>
